<compile_context>
chip_gen: v6e
topology: v6e:2x2x1
jax: 0.10.0
libtpu: 0.0.40
codegen_flags: <defaults>
</compile_context>

<pallas_src>
import functools

import jax
import jax.numpy as jnp
from jax.experimental import pallas as pl
from jax.experimental.pallas import tpu as pltpu

EPS = 1e-7  # gtorch_utils.constants.EPSILON


def _specificity_kernel(p_ref, t_ref, o_ref, s_acc, fp_acc, *,
                        with_logits, n_valid, col_blk):
    """Per-row specificity with lane-wide accumulation over the spatial axis.

    p_ref, t_ref : (ROW_BLK, COL_BLK) tiles of preds / targets
    o_ref        : (ROW_BLK, 1) per-(batch,class) specificity (written once)
    s_acc        : (ROW_BLK, 128) f32 accumulator of sum(1 - t)        (= tn + fp)
    fp_acc       : (ROW_BLK, 128) f32 accumulator of sum((1 - t) * p)  (= fp)
    """
    k = pl.program_id(1)

    @pl.when(k == 0)
    def _():
        s_acc[...] = jnp.zeros_like(s_acc)
        fp_acc[...] = jnp.zeros_like(fp_acc)

    p = p_ref[...].astype(jnp.float32)
    t = t_ref[...].astype(jnp.float32)
    if with_logits:
        # TODO(synk): only sigmoid is supported in-kernel; arbitrary
        # logits_transform callables from the PyTorch module are not lowered.
        p = jax.nn.sigmoid(p)

    not_t = 1.0 - t
    if n_valid % col_blk != 0:
        # Ragged last column tile: zero out lanes beyond the true spatial size
        # (masks both factors so OOB garbage/NaN cannot leak into the sums).
        col = jax.lax.broadcasted_iota(jnp.int32, p.shape, 1)
        valid = (k * col_blk + col) < n_valid
        not_t = jnp.where(valid, not_t, 0.0)
        p = jnp.where(valid, p, 0.0)
    prod = not_t * p

    # Lane-wide accumulation: pure VALU adds in the steady state, no per-tile
    # cross-lane reduction.  col_blk is a static multiple of 128.
    for c in range(col_blk // 128):
        sl = slice(c * 128, (c + 1) * 128)
        s_acc[...] += not_t[:, sl]
        fp_acc[...] += prod[:, sl]

    @pl.when(k == pl.num_programs(1) - 1)
    def _():
        s = jnp.sum(s_acc[...], axis=1, keepdims=True)    # tn + fp
        fp = jnp.sum(fp_acc[...], axis=1, keepdims=True)  # fp
        tn = s - fp
        o_ref[...] = (tn + EPS) / (s + EPS)


def _round_up(x, m):
    return ((x + m - 1) // m) * m


def _per_row_specificity(p2d, t2d, *, with_logits,
                         row_blk_max=256, col_blk_max=2048):
    """p2d, t2d: (R, N) arrays. Returns (R,) specificity per row."""
    R, N = p2d.shape

    # Sublane alignment for the block shapes: 8 for 4-byte dtypes,
    # 16 for 2-byte (bf16), 32 for 1-byte.
    itemsize = min(jnp.dtype(p2d.dtype).itemsize, jnp.dtype(t2d.dtype).itemsize)
    sub = max(8, 32 // max(int(itemsize), 1))

    r_aligned = _round_up(R, sub)
    if r_aligned >= 2 * sub:
        # Keep >= 2 row blocks so both TensorCores are used on v7x.
        row_blk = max(sub, min(row_blk_max, ((r_aligned // 2) // sub) * sub))
    else:
        row_blk = r_aligned
    col_blk = max(128, min(col_blk_max, _round_up(N, 128)))

    grid = (pl.cdiv(R, row_blk), pl.cdiv(N, col_blk))

    kernel = functools.partial(
        _specificity_kernel,
        with_logits=with_logits,
        n_valid=N,
        col_blk=col_blk,
    )

    spec = pl.pallas_call(
        kernel,
        out_shape=jax.ShapeDtypeStruct((R, 1), jnp.float32),
        grid_spec=pltpu.PrefetchScalarGridSpec(
            num_scalar_prefetch=0,
            grid=grid,
            in_specs=[
                pl.BlockSpec((row_blk, col_blk), lambda i, k: (i, k)),
                pl.BlockSpec((row_blk, col_blk), lambda i, k: (i, k)),
            ],
            out_specs=pl.BlockSpec((row_blk, 1), lambda i, k: (i, 0)),
            scratch_shapes=[
                pltpu.VMEM((row_blk, 128), jnp.float32),
                pltpu.VMEM((row_blk, 128), jnp.float32),
            ],
        ),
        compiler_params=pltpu.CompilerParams(
            dimension_semantics=("parallel", "arbitrary"),
            vmem_limit_bytes=48 * 1024 * 1024,
        ),
    )(p2d, t2d)

    return spec[:, 0]


def specificity_loss(preds, targets, *, with_logits=False, per_class=False):
    """JAX/Pallas equivalent of SpecificityLoss.forward.

    preds, targets: [B, C, ...] (e.g. NCHW).  Returns scalar loss
    (or per-class vector of shape [C] if per_class=True).
    """
    assert preds.shape == targets.shape
    B, C = preds.shape[0], preds.shape[1]
    p2d = preds.reshape(B * C, -1)
    t2d = targets.reshape(B * C, -1)

    spec = _per_row_specificity(p2d, t2d, with_logits=with_logits)  # (B*C,)
    spec = spec.reshape(B, C)

    if per_class:
        metric = jnp.mean(spec, axis=0)   # (C,)
    else:
        metric = jnp.mean(spec)           # scalar
    return 1.0 - metric


if __name__ == "__main__":
    key = jax.random.PRNGKey(0)
    k1, k2 = jax.random.split(key)

    B, C, H, W = 2, 4, 16, 16
    preds = jax.random.uniform(k1, (B, C, H, W), dtype=jnp.float32)
    targets = (jax.random.uniform(k2, (B, C, H, W)) > 0.5).astype(jnp.float32)

    loss = specificity_loss(preds, targets, with_logits=False, per_class=False)
    loss = jax.block_until_ready(loss)

    # pure-JAX reference check (probabilities path)
    p = preds.reshape(B, C, -1)
    t = targets.reshape(B, C, -1)
    tn = jnp.sum((1 - t) * (1 - p), axis=-1)
    fp = jnp.sum((1 - t) * p, axis=-1)
    ref = 1.0 - jnp.mean((tn + EPS) / (tn + fp + EPS))
    assert jnp.allclose(loss, ref, atol=1e-6, rtol=1e-6), (loss, ref)

    # logits + per_class path
    logits = preds * 4 - 2
    loss_pc = jax.block_until_ready(
        specificity_loss(logits, targets, with_logits=True, per_class=True)
    )
    assert loss_pc.shape == (C,)
    pl_ = jax.nn.sigmoid(logits).reshape(B, C, -1)
    tn2 = jnp.sum((1 - t) * (1 - pl_), axis=-1)
    fp2 = jnp.sum((1 - t) * pl_, axis=-1)
    ref_pc = 1.0 - jnp.mean((tn2 + EPS) / (tn2 + fp2 + EPS), axis=0)
    assert jnp.allclose(loss_pc, ref_pc, atol=1e-5, rtol=1e-5), (loss_pc, ref_pc)

    # non-128-multiple spatial size exercises the in-kernel tail masking
    Hs, Ws = 13, 17
    preds_s = jax.random.uniform(k1, (B, C, Hs, Ws), dtype=jnp.float32)
    targets_s = (jax.random.uniform(k2, (B, C, Hs, Ws)) > 0.5).astype(jnp.float32)
    loss_s = jax.block_until_ready(specificity_loss(preds_s, targets_s))
    ps = preds_s.reshape(B, C, -1)
    ts = targets_s.reshape(B, C, -1)
    tns = jnp.sum((1 - ts) * (1 - ps), axis=-1)
    fps = jnp.sum((1 - ts) * ps, axis=-1)
    ref_s = 1.0 - jnp.mean((tns + EPS) / (tns + fps + EPS))
    assert jnp.allclose(loss_s, ref_s, atol=1e-6, rtol=1e-6), (loss_s, ref_s)

    print("KERNEL_OK")
</pallas_src>

<mosaic_0001>
module attributes {stable_mosaic.version = 11 : i64} {
  func.func @_specificity_kernel(%arg0: i32, %arg1: i32, %arg2: memref<8x256xf32, #tpu.memory_space<vmem>>, %arg3: memref<8x256xf32, #tpu.memory_space<vmem>>, %arg4: memref<8x1xf32, #tpu.memory_space<vmem>>, %arg5: memref<8x128xf32, #tpu.memory_space<vmem>>, %arg6: memref<8x128xf32, #tpu.memory_space<vmem>>) attributes {dimension_semantics = [#tpu.dimension_semantics<parallel>, #tpu.dimension_semantics<arbitrary>], iteration_bounds = array<i64: 1, 1>, scalar_prefetch = 0 : i64, scratch_operands = 2 : i64, tpu.core_type = #tpu.core_type<tc>, window_params = [{transform_indices = @transform_0, window_bounds = array<i64: 8, 256>}, {transform_indices = @transform_1, window_bounds = array<i64: 8, 256>}, {transform_indices = @transform_2, window_bounds = array<i64: 8, 1>}]} {
    %c0_i32 = arith.constant 0 : i32
    %0 = arith.cmpi eq, %arg1, %c0_i32 : i32
    %1 = arith.extui %0 : i1 to i32
    %c0_i32_0 = arith.constant 0 : i32
    %2 = arith.cmpi ne, %1, %c0_i32_0 : i32
    scf.if %2 {
      %cst_22 = arith.constant 0.000000e+00 : f32
      %27 = vector.broadcast %cst_22 : f32 to vector<8x128xf32>
      %c0_23 = arith.constant 0 : index
      %c0_24 = arith.constant 0 : index
      %28 = vector.load %arg5[%c0_23, %c0_24] : memref<8x128xf32, #tpu.memory_space<vmem>>, vector<8x128xf32>
      tpu.vector_store %arg5[%c0_23, %c0_24], %27 {strides = array<i32>} : memref<8x128xf32, #tpu.memory_space<vmem>>, vector<8x128xf32>,
      %cst_25 = arith.constant 0.000000e+00 : f32
      %29 = vector.broadcast %cst_25 : f32 to vector<8x128xf32>
      %c0_26 = arith.constant 0 : index
      %c0_27 = arith.constant 0 : index
      %30 = vector.load %arg6[%c0_26, %c0_27] : memref<8x128xf32, #tpu.memory_space<vmem>>, vector<8x128xf32>
      tpu.vector_store %arg6[%c0_26, %c0_27], %29 {strides = array<i32>} : memref<8x128xf32, #tpu.memory_space<vmem>>, vector<8x128xf32>,
    } else {
    }
    %c0 = arith.constant 0 : index
    %c0_1 = arith.constant 0 : index
    %3 = vector.load %arg2[%c0, %c0_1] : memref<8x256xf32, #tpu.memory_space<vmem>>, vector<8x256xf32>
    %c0_2 = arith.constant 0 : index
    %c0_3 = arith.constant 0 : index
    %4 = vector.load %arg3[%c0_2, %c0_3] : memref<8x256xf32, #tpu.memory_space<vmem>>, vector<8x256xf32>
    %cst = arith.constant 1.000000e+00 : f32
    %5 = vector.broadcast %cst : f32 to vector<8x256xf32>
    %6 = arith.subf %5, %4 : vector<8x256xf32>
    %7 = arith.mulf %6, %3 : vector<8x256xf32>
    %c0_4 = arith.constant 0 : index
    %c0_5 = arith.constant 0 : index
    %8 = vector.load %arg5[%c0_4, %c0_5] : memref<8x128xf32, #tpu.memory_space<vmem>>, vector<8x128xf32>
    %9 = vector.extract_strided_slice %6 {offsets = [0, 0], sizes = [8, 128], strides = [1, 1]} : vector<8x256xf32> to vector<8x128xf32>
    %10 = arith.addf %8, %9 : vector<8x128xf32>
    %c0_6 = arith.constant 0 : index
    %c0_7 = arith.constant 0 : index
    %11 = vector.load %arg5[%c0_6, %c0_7] : memref<8x128xf32, #tpu.memory_space<vmem>>, vector<8x128xf32>
    tpu.vector_store %arg5[%c0_6, %c0_7], %10 {strides = array<i32>} : memref<8x128xf32, #tpu.memory_space<vmem>>, vector<8x128xf32>,
    %c0_8 = arith.constant 0 : index
    %c0_9 = arith.constant 0 : index
    %12 = vector.load %arg6[%c0_8, %c0_9] : memref<8x128xf32, #tpu.memory_space<vmem>>, vector<8x128xf32>
    %13 = vector.extract_strided_slice %7 {offsets = [0, 0], sizes = [8, 128], strides = [1, 1]} : vector<8x256xf32> to vector<8x128xf32>
    %14 = arith.addf %12, %13 : vector<8x128xf32>
    %c0_10 = arith.constant 0 : index
    %c0_11 = arith.constant 0 : index
    %15 = vector.load %arg6[%c0_10, %c0_11] : memref<8x128xf32, #tpu.memory_space<vmem>>, vector<8x128xf32>
    tpu.vector_store %arg6[%c0_10, %c0_11], %14 {strides = array<i32>} : memref<8x128xf32, #tpu.memory_space<vmem>>, vector<8x128xf32>,
    %c0_12 = arith.constant 0 : index
    %c0_13 = arith.constant 0 : index
    %16 = vector.load %arg5[%c0_12, %c0_13] : memref<8x128xf32, #tpu.memory_space<vmem>>, vector<8x128xf32>
    %17 = vector.extract_strided_slice %6 {offsets = [0, 128], sizes = [8, 128], strides = [1, 1]} : vector<8x256xf32> to vector<8x128xf32>
    %18 = arith.addf %16, %17 : vector<8x128xf32>
    %c0_14 = arith.constant 0 : index
    %c0_15 = arith.constant 0 : index
    %19 = vector.load %arg5[%c0_14, %c0_15] : memref<8x128xf32, #tpu.memory_space<vmem>>, vector<8x128xf32>
    tpu.vector_store %arg5[%c0_14, %c0_15], %18 {strides = array<i32>} : memref<8x128xf32, #tpu.memory_space<vmem>>, vector<8x128xf32>,
    %c0_16 = arith.constant 0 : index
    %c0_17 = arith.constant 0 : index
    %20 = vector.load %arg6[%c0_16, %c0_17] : memref<8x128xf32, #tpu.memory_space<vmem>>, vector<8x128xf32>
    %21 = vector.extract_strided_slice %7 {offsets = [0, 128], sizes = [8, 128], strides = [1, 1]} : vector<8x256xf32> to vector<8x128xf32>
    %22 = arith.addf %20, %21 : vector<8x128xf32>
    %c0_18 = arith.constant 0 : index
    %c0_19 = arith.constant 0 : index
    %23 = vector.load %arg6[%c0_18, %c0_19] : memref<8x128xf32, #tpu.memory_space<vmem>>, vector<8x128xf32>
    tpu.vector_store %arg6[%c0_18, %c0_19], %22 {strides = array<i32>} : memref<8x128xf32, #tpu.memory_space<vmem>>, vector<8x128xf32>,
    %c0_i32_20 = arith.constant 0 : i32
    %24 = arith.cmpi eq, %arg1, %c0_i32_20 : i32
    %25 = arith.extui %24 : i1 to i32
    %c0_i32_21 = arith.constant 0 : i32
    %26 = arith.cmpi ne, %25, %c0_i32_21 : i32
    scf.if %26 {
      %c0_22 = arith.constant 0 : index
      %c0_23 = arith.constant 0 : index
      %27 = vector.load %arg5[%c0_22, %c0_23] : memref<8x128xf32, #tpu.memory_space<vmem>>, vector<8x128xf32>
      %cst_24 = arith.constant dense<0.000000e+00> : vector<8xf32>
      %28 = vector.multi_reduction <add>, %27, %cst_24 [1] : vector<8x128xf32> to vector<8xf32>
      %29 = vector.shape_cast %28 : vector<8xf32> to vector<8x1xf32>
      %c0_25 = arith.constant 0 : index
      %c0_26 = arith.constant 0 : index
      %30 = vector.load %arg6[%c0_25, %c0_26] : memref<8x128xf32, #tpu.memory_space<vmem>>, vector<8x128xf32>
      %cst_27 = arith.constant dense<0.000000e+00> : vector<8xf32>
      %31 = vector.multi_reduction <add>, %30, %cst_27 [1] : vector<8x128xf32> to vector<8xf32>
      %32 = vector.shape_cast %31 : vector<8xf32> to vector<8x1xf32>
      %33 = arith.subf %29, %32 : vector<8x1xf32>
      %cst_28 = arith.constant 1.000000e-07 : f32
      %34 = vector.broadcast %cst_28 : f32 to vector<8x1xf32>
      %35 = arith.addf %33, %34 : vector<8x1xf32>
      %cst_29 = arith.constant 1.000000e-07 : f32
      %36 = vector.broadcast %cst_29 : f32 to vector<8x1xf32>
      %37 = arith.addf %29, %36 : vector<8x1xf32>
      %38 = arith.divf %35, %37 : vector<8x1xf32>
      %c0_30 = arith.constant 0 : index
      %c0_31 = arith.constant 0 : index
      %39 = vector.load %arg4[%c0_30, %c0_31] : memref<8x1xf32, #tpu.memory_space<vmem>>, vector<8x1xf32>
      tpu.vector_store %arg4[%c0_30, %c0_31], %38 {strides = array<i32>} : memref<8x1xf32, #tpu.memory_space<vmem>>, vector<8x1xf32>,
    } else {
    }
    return
  }
  func.func @transform_0(%arg0: i32, %arg1: i32) -> (i32, i32) {
    %c0_i32 = arith.constant 0 : i32
    return %arg0, %arg1 : i32, i32
  }
  func.func @transform_1(%arg0: i32, %arg1: i32) -> (i32, i32) {
    %c0_i32 = arith.constant 0 : i32
    return %arg0, %arg1 : i32, i32
  }
  func.func @transform_2(%arg0: i32, %arg1: i32) -> (i32, i32) {
    %c0_i32 = arith.constant 0 : i32
    %c0_i32_0 = arith.constant 0 : i32
    return %arg0, %c0_i32 : i32, i32
  }
}

</mosaic_0001>

<bundles_post_ra>
// kernel: tpu_custom_call.1
= control target key start
LH: loop header
LB: loop body
LE: loop exit
PB: predicated region body
PF: predicated region fallthrough
CT: control target
= control target key end

     0   :  { %7 = vsyncpa [#allocation5], 0  ;;  %s157_s0 = inlined_call_operand.hbm [shape: f32[8,256], index: 0, kind: input, shape index: {}]   ;;  %s158_s1 = inlined_call_operand.hbm [shape: f32[8,256], index: 1, kind: input, shape index: {}]   ;;  %s159_s2 = inlined_call_operand.vmem [shape: f32[8,1], index: 2, kind: output, shape index: {}]  }
   0x1   :  { %8 = vsyncpa [#allocation7], 0  ;;  %s131_s9 = smov [#allocation4]   ;;  %s132_s11 = smov [#allocation6]  }
   0x2   :  { %s15_s10 = sshll.u32 %s131_s9, 4  ;;  %s25_s12 = sshll.u32 %s132_s11, 4  ;;  %s16_s10 = int_to_ptr.vmem [resolvable:$true] %s15_s10  ;;  %s26_s12 = int_to_ptr.vmem [resolvable:$true] %s25_s12 }
   0x3   :  { %s95_s13 = scalar_lea.vmem %s16_s10, 256  ;;  %p100_p1 = scmp.lt.s32.totalorder %s16_s10, %s16_s10 }
   0x4   :  { %p96_p0 = scmp.ne.s32.totalorder %s16_s10, %s95_s13  ;;  %p101_p2 = scmp.lt.s32.totalorder %s95_s13, %s95_s13 }
   0x6   :  { %p102_p3 = por %p101_p2, %p100_p1 }
   0x8   :  { %p103_p4 = pnand %p102_p3, %p96_p0 }
   0xa   :  { %106 = shalt.err (!%p103_p4)
}
   0xb   :  { %18 = dma.hbm_to_vmem [thread:$0]  %s157_s0, 256, %s16_s10, [#allocation5]  }
   0xc   :  { %s115_s16 = scalar_lea.vmem %s26_s12, 256  ;;  %p120_p6 = scmp.lt.s32.totalorder %s26_s12, %s26_s12 }
   0xd   :  { %p116_p5 = scmp.ne.s32.totalorder %s26_s12, %s115_s16  ;;  %p121_p7 = scmp.lt.s32.totalorder %s115_s16, %s115_s16 }
   0xf   :  { %p122_p8 = por %p121_p7, %p120_p6 }
  0x11   :  { %p123_p9 = pnand %p122_p8, %p116_p5 }
  0x13   :  { %126 = shalt.err (!%p123_p9)
}
  0x14   :  { %28 = dma.hbm_to_vmem [thread:$0]  %s158_s1, 256, %s26_s12, [#allocation7]  }
  0x15   :  { %127 = dma.done.wait [#allocation5], 256  }
  0x16   :  { %128 = vsyncadd [#allocation5], 4294967040 }
  0x17   :  { %129 = dma.done.wait [#allocation7], 256  }
  0x18   :  { %130 = vsyncadd [#allocation7], 4294967040  ;;  %v43_v0 = vld [vmem:[#allocation6] sm:$0xff]  ;;  %v44_v1 = vld [vmem:[#allocation6 + $0x8] sm:$0xff]  ;;  %vm75_vm0 = vcmask 7168  }
  0x19   :  { %v41_v2 = vld [vmem:[#allocation4] sm:$0xff]  ;;  %v45_v3 = vsub.f32 1.0, %v43_v0  ;;  %v46_v4 = vsub.f32 1.0, %v44_v1  ;;  %v42_v5 = vld [vmem:[#allocation4 + $0x8] sm:$0xff] }
  0x1b   :  { %v56_v6 = vadd.f32 %v46_v4, %v45_v3  ;;  %v47_v7 = vmul.f32 %v45_v3, %v41_v2  ;;  %v48_v8 = vmul.f32 %v46_v4, %v42_v5 }
  0x1d   :  { %65 = vadd.xlane.f32.xlu0 %v56_v6  ;;  %v59_v9 = vadd.f32 %v48_v8, %v47_v7 }
  0x21   :  { %68 = vadd.xlane.f32.xlu0 %v59_v9 }
  0xa6   :  { %v66_v10 = vpop.xlane.xlu0 %65 }
  0xa7   :  { %v72_v11 = vadd.f32 1e-07, %v66_v10 }
  0xa9   :  { %85 = vrcp.f32 %v72_v11 }
  0xaa   :  { %v69_v12 = vpop.xlane.xlu0 %68 }
  0xab   :  { %v70_v13 = vsub.f32 %v66_v10, %v69_v12 }
  0xad   :  { %v71_v14 = vadd.f32 1e-07, %v70_v13 }
  0xb6   :  { %v86_v15 = vpop.eup %85 }
  0xb7   :  { %v74_v16 = vmul.f32 %v86_v15, %v71_v14 }
  0xb9   :  { %76 = vst.msk [vmem:[%s159_s2] sm:$0xff] %vm75_vm0, %v74_v16 }
  0xba   :  { %81 = vsyncpa [#allocation5], 1 }
  0xbb   :  { %82 = vsyncpa [#allocation7], 1 }

</bundles_post_ra>
